<compile_context>
chip_gen: v5e
topology: v5e:2x2
jax: 0.10.0
libtpu: 0.0.40
codegen_flags: <defaults>
</compile_context>

<pallas_src>
import functools

import jax
import jax.numpy as jnp
from jax.experimental import pallas as pl
from jax.experimental.pallas import tpu as pltpu

NEG_BIG = -1e30  # finite stand-in for -inf when masking non-negative pairs


def _ntxent_rowblock_kernel(xn_full_ref, xn_blk_ref, lab_row_ref, lab_col_ref,
                            out_ref, *, tau, tm, two_n):
    """One row block of the NTXent loss.

    xn_full_ref : (2N_pad, H_pad) bf16  -- resident, all columns
    xn_blk_ref  : (TM,     H_pad) bf16  -- streamed row block
    lab_row_ref : (1, 2N_pad) int32     -- labels as a row
    lab_col_ref : (TM, 1)    int32      -- labels of the block rows as a column
    out_ref     : (8, 2N_pad) f32       -- partial column-sums (row 0), rest 0
    """
    row_start = pl.program_id(0) * tm

    # Cosine similarities of the block rows against all columns.
    # bf16 operands feed the MXU natively; accumulation is f32.
    logits = jax.lax.dot_general(
        xn_blk_ref[...], xn_full_ref[...], (((1,), (1,)), ((), ())),
        preferred_element_type=jnp.float32) * (1.0 / tau)          # (TM, 2N_pad)

    same = lab_col_ref[...] == lab_row_ref[...]                    # (TM, 2N_pad)
    col = jax.lax.broadcasted_iota(jnp.int32, logits.shape, 1)
    row = row_start + jax.lax.broadcasted_iota(jnp.int32, logits.shape, 0)
    pos_mask = jnp.logical_and(same, row != col)
    neg_mask = jnp.logical_and(jnp.logical_not(same), col < two_n)  # drop pad cols

    # Row-wise log-sum-exp over negatives; masked entries sit at NEG_BIG and
    # underflow exp() to exactly 0, so no extra select is needed around the sum.
    neg_logits = jnp.where(neg_mask, logits, NEG_BIG)
    m = jnp.max(neg_logits, axis=1, keepdims=True)                 # (TM, 1)
    m_safe = jnp.where(m < NEG_BIG * 0.5, 0.0, m)                  # rows w/o negatives
    z = jnp.sum(jnp.exp(neg_logits - m_safe), axis=1, keepdims=True)
    lse_neg = m_safe + jnp.log(z)                                  # (TM, 1)

    # NTXent per positive pair: -log(exp(s_ap/t)/(exp(s_ap/t)+sum_neg exp))
    #                          = log(1 + exp(lse_neg - s_ap/t))
    per_pair = jnp.log(1.0 + jnp.exp(lse_neg - logits))            # (TM, 2N_pad)
    colsum = jnp.sum(jnp.where(pos_mask, per_pair, 0.0),
                     axis=0, keepdims=True)                        # (1, 2N_pad)

    # Lane-dense, (8,128)-aligned partial output: row 0 holds the sums.
    sub = jax.lax.broadcasted_iota(jnp.int32, out_ref.shape, 0)
    out_ref[...] = jnp.where(sub == 0, colsum, 0.0)


def _round_up(x, m):
    return ((x + m - 1) // m) * m


def sap_pairwise_infonce_forward(last_hidden_state1, last_hidden_state2, labels,
                                 tau=0.04, block_rows=256):
    """Forward of Sap_Metric_Learning_pairwise (agg_mode='cls', use_miner=False,
    loss='infoNCE').

    last_hidden_state1/2: (N, L, H) float32 encoder hidden states.
    labels: (N,) int labels.
    Returns scalar float32 loss.
    """
    n, _, h = last_hidden_state1.shape
    two_n = 2 * n

    # agg_mode == 'cls' pooling + concat (glue, done in XLA)
    e1 = last_hidden_state1[:, 0, :]
    e2 = last_hidden_state2[:, 0, :]
    x = jnp.concatenate([e1, e2], axis=0).astype(jnp.float32)      # (2N, H)

    # CosineSimilarity: L2-normalize once in the wrapper.
    xn = x * jax.lax.rsqrt(jnp.sum(x * x, axis=-1, keepdims=True) + 1e-12)

    # Pad to lane/sublane-friendly shapes.
    h_pad = _round_up(h, 128)
    two_n_pad = _round_up(two_n, 128)
    tm = min(int(block_rows), two_n_pad)
    two_n_pad = _round_up(two_n_pad, tm)
    num_blocks = two_n_pad // tm

    xn_bf = jnp.pad(xn, ((0, two_n_pad - two_n), (0, h_pad - h))
                    ).astype(jnp.bfloat16)                         # (2N_pad, H_pad)

    lab2 = jnp.concatenate([labels, labels], axis=0).astype(jnp.int32)  # (2N,)
    # Unique negative sentinel labels on pad rows: never positive with anything.
    sentinels = -(jnp.arange(two_n_pad - two_n, dtype=jnp.int32) + 1)
    lab_full = jnp.concatenate([lab2, sentinels], axis=0)               # (2N_pad,)
    lab_row = lab_full.reshape(1, two_n_pad)
    lab_col = lab_full.reshape(two_n_pad, 1)

    # Number of positive (anchor, positive) ordered pairs -- computed in XLA.
    cnt = (jnp.sum((lab2[:, None] == lab2[None, :]).astype(jnp.float32))
           - jnp.float32(two_n))

    kernel = functools.partial(_ntxent_rowblock_kernel, tau=float(tau),
                               tm=tm, two_n=two_n)
    partials = pl.pallas_call(
        kernel,
        out_shape=jax.ShapeDtypeStruct((num_blocks * 8, two_n_pad), jnp.float32),
        grid=(num_blocks,),
        in_specs=[
            pl.BlockSpec((two_n_pad, h_pad), lambda i: (0, 0)),  # resident columns
            pl.BlockSpec((tm, h_pad), lambda i: (i, 0)),         # streamed row block
            pl.BlockSpec((1, two_n_pad), lambda i: (0, 0)),      # labels (row form)
            pl.BlockSpec((tm, 1), lambda i: (i, 0)),             # labels (column form)
        ],
        out_specs=pl.BlockSpec((8, two_n_pad), lambda i: (i, 0)),
        compiler_params=pltpu.CompilerParams(
            dimension_semantics=("parallel",),
            vmem_limit_bytes=48 * 1024 * 1024),
    )(xn_bf, xn_bf, lab_row, lab_col)

    return jnp.sum(partials) / cnt


def _reference_loss(last_hidden_state1, last_hidden_state2, labels, tau=0.04):
    """Pure-JAX (f32) reference of the same NTXent forward."""
    e1 = last_hidden_state1[:, 0, :]
    e2 = last_hidden_state2[:, 0, :]
    x = jnp.concatenate([e1, e2], axis=0).astype(jnp.float32)
    xn = x * jax.lax.rsqrt(jnp.sum(x * x, axis=-1, keepdims=True) + 1e-12)
    sim = xn @ xn.T
    lab = jnp.concatenate([labels, labels], axis=0)
    same = lab[:, None] == lab[None, :]
    eye = jnp.eye(lab.shape[0], dtype=bool)
    pos_mask = same & ~eye
    neg_mask = ~same
    logits = sim / tau
    neg_logits = jnp.where(neg_mask, logits, NEG_BIG)
    m = jnp.max(neg_logits, axis=1, keepdims=True)
    m_safe = jnp.where(m < NEG_BIG * 0.5, 0.0, m)
    z = jnp.sum(jnp.exp(neg_logits - m_safe), axis=1, keepdims=True)
    lse_neg = m_safe + jnp.log(z)
    per_pair = jnp.log1p(jnp.exp(lse_neg - logits))
    return (jnp.sum(jnp.where(pos_mask, per_pair, 0.0))
            / jnp.sum(pos_mask.astype(jnp.float32)))


if __name__ == "__main__":
    # Check 1: small shapes, single row block. N=8, L=8, H=32, 4 label classes.
    N, L, H = 8, 8, 32
    key = jax.random.PRNGKey(0)
    k1, k2, k3, k4, k5, k6 = jax.random.split(key, 6)
    hs1 = jax.random.normal(k1, (N, L, H), dtype=jnp.float32)
    hs2 = jax.random.normal(k2, (N, L, H), dtype=jnp.float32)
    labels = jax.random.randint(k3, (N,), 0, 4, dtype=jnp.int32)

    loss = jax.block_until_ready(
        sap_pairwise_infonce_forward(hs1, hs2, labels, tau=0.04))
    ref = _reference_loss(hs1, hs2, labels, tau=0.04)
    # bf16 MXU operands perturb the loss slightly -> tolerance loosened per review.
    assert jnp.allclose(loss, ref, rtol=2e-2, atol=2e-2), (loss, ref)

    # Check 2: exercises multi-row-block tiling (grid > 1, real rows span blocks).
    N2, L2, H2 = 80, 4, 32
    hs1b = jax.random.normal(k4, (N2, L2, H2), dtype=jnp.float32)
    hs2b = jax.random.normal(k5, (N2, L2, H2), dtype=jnp.float32)
    labels_b = jax.random.randint(k6, (N2,), 0, 10, dtype=jnp.int32)
    loss_b = jax.block_until_ready(
        sap_pairwise_infonce_forward(hs1b, hs2b, labels_b, tau=0.04,
                                     block_rows=128))
    ref_b = _reference_loss(hs1b, hs2b, labels_b, tau=0.04)
    assert jnp.allclose(loss_b, ref_b, rtol=2e-2, atol=2e-2), (loss_b, ref_b)

    print("KERNEL_OK")
</pallas_src>

<mosaic_0001>
module attributes {stable_mosaic.version = 11 : i64} {
  func.func @_ntxent_rowblock_kernel(%arg0: i32, %arg1: memref<128x128xbf16, #tpu.memory_space<vmem>>, %arg2: memref<128x128xbf16, #tpu.memory_space<vmem>>, %arg3: memref<1x128xi32, #tpu.memory_space<vmem>>, %arg4: memref<128x1xi32, #tpu.memory_space<vmem>>, %arg5: memref<8x128xf32, #tpu.memory_space<vmem>>) attributes {dimension_semantics = [#tpu.dimension_semantics<parallel>], iteration_bounds = array<i64: 1>, scalar_prefetch = 0 : i64, scratch_operands = 0 : i64, tpu.core_type = #tpu.core_type<tc>, window_params = [{pipeline_mode = #tpu.pipeline_mode<synchronous>, transform_indices = @transform_0, window_bounds = array<i64: 128, 128>}, {transform_indices = @transform_1, window_bounds = array<i64: 128, 128>}, {pipeline_mode = #tpu.pipeline_mode<synchronous>, transform_indices = @transform_2, window_bounds = array<i64: 1, 128>}, {transform_indices = @transform_3, window_bounds = array<i64: 128, 1>}, {transform_indices = @transform_4, window_bounds = array<i64: 8, 128>}]} {
    %c128_i32 = arith.constant 128 : i32
    %0 = arith.muli %arg0, %c128_i32 : i32
    %c0 = arith.constant 0 : index
    %c0_0 = arith.constant 0 : index
    %1 = vector.load %arg2[%c0, %c0_0] : memref<128x128xbf16, #tpu.memory_space<vmem>>, vector<128x128xbf16>
    %c0_1 = arith.constant 0 : index
    %c0_2 = arith.constant 0 : index
    %2 = vector.load %arg1[%c0_1, %c0_2] : memref<128x128xbf16, #tpu.memory_space<vmem>>, vector<128x128xbf16>
    %cst = arith.constant dense<0.000000e+00> : vector<128x128xf32>
    %3 = tpu.matmul %1, %2, %cst {dimension_numbers = #tpu.dot_dimension_numbers<[1], [1], [0], [0], [0, 0, 1, 0], [], []>} : vector<128x128xbf16>, vector<128x128xbf16>, vector<128x128xf32> -> vector<128x128xf32>
    %cst_3 = arith.constant 2.500000e+01 : f32
    %4 = vector.broadcast %cst_3 : f32 to vector<128x128xf32>
    %5 = arith.mulf %3, %4 : vector<128x128xf32>
    %c0_4 = arith.constant 0 : index
    %c0_5 = arith.constant 0 : index
    %6 = vector.load %arg4[%c0_4, %c0_5] : memref<128x1xi32, #tpu.memory_space<vmem>>, vector<128x1xi32>
    %c0_6 = arith.constant 0 : index
    %c0_7 = arith.constant 0 : index
    %7 = vector.load %arg3[%c0_6, %c0_7] : memref<1x128xi32, #tpu.memory_space<vmem>>, vector<1x128xi32>
    %8 = vector.broadcast %6 : vector<128x1xi32> to vector<128x128xi32>
    %9 = vector.broadcast %7 : vector<1x128xi32> to vector<128x128xi32>
    %10 = arith.cmpi eq, %8, %9 : vector<128x128xi32>
    %11 = tpu.iota {dimensions = array<i32: 1>} : vector<128x128xi32>
    %12 = tpu.iota {dimensions = array<i32: 0>} : vector<128x128xi32>
    %13 = vector.broadcast %0 : i32 to vector<128x128xi32>
    %14 = arith.addi %13, %12 : vector<128x128xi32>
    %15 = arith.cmpi ne, %14, %11 : vector<128x128xi32>
    %16 = arith.andi %10, %15 : vector<128x128xi1>
    %cst_8 = arith.constant dense<true> : vector<128x128xi1>
    %17 = arith.xori %10, %cst_8 : vector<128x128xi1>
    %c16_i32 = arith.constant 16 : i32
    %18 = vector.broadcast %c16_i32 : i32 to vector<128x128xi32>
    %19 = arith.cmpi slt, %11, %18 : vector<128x128xi32>
    %20 = arith.andi %17, %19 : vector<128x128xi1>
    %cst_9 = arith.constant -1.000000e+30 : f32
    %21 = vector.broadcast %cst_9 : f32 to vector<128x128xf32>
    %22 = arith.select %20, %5, %21 : vector<128x128xi1>, vector<128x128xf32>
    %cst_10 = arith.constant dense<0xFF800000> : vector<128xf32>
    %23 = vector.multi_reduction <maximumf>, %22, %cst_10 [1] : vector<128x128xf32> to vector<128xf32>
    %24 = vector.shape_cast %23 : vector<128xf32> to vector<128x1xf32>
    %cst_11 = arith.constant -5.000000e+29 : f32
    %25 = vector.broadcast %cst_11 : f32 to vector<128x1xf32>
    %26 = arith.cmpf olt, %24, %25 : vector<128x1xf32>
    %cst_12 = arith.constant 0.000000e+00 : f32
    %27 = vector.broadcast %cst_12 : f32 to vector<128x1xf32>
    %28 = arith.select %26, %27, %24 : vector<128x1xi1>, vector<128x1xf32>
    %29 = vector.broadcast %28 : vector<128x1xf32> to vector<128x128xf32>
    %30 = arith.subf %22, %29 : vector<128x128xf32>
    %31 = math.exp %30 : vector<128x128xf32>
    %cst_13 = arith.constant dense<0.000000e+00> : vector<128xf32>
    %32 = vector.multi_reduction <add>, %31, %cst_13 [1] : vector<128x128xf32> to vector<128xf32>
    %33 = vector.shape_cast %32 : vector<128xf32> to vector<128x1xf32>
    %34 = math.log %33 : vector<128x1xf32>
    %35 = arith.addf %28, %34 : vector<128x1xf32>
    %36 = vector.broadcast %35 : vector<128x1xf32> to vector<128x128xf32>
    %37 = arith.subf %36, %5 : vector<128x128xf32>
    %38 = math.exp %37 : vector<128x128xf32>
    %cst_14 = arith.constant 1.000000e+00 : f32
    %39 = vector.broadcast %cst_14 : f32 to vector<128x128xf32>
    %40 = arith.addf %39, %38 : vector<128x128xf32>
    %41 = math.log %40 : vector<128x128xf32>
    %cst_15 = arith.constant 0.000000e+00 : f32
    %42 = vector.broadcast %cst_15 : f32 to vector<128x128xf32>
    %43 = arith.select %16, %41, %42 : vector<128x128xi1>, vector<128x128xf32>
    %cst_16 = arith.constant dense<0.000000e+00> : vector<128xf32>
    %44 = vector.multi_reduction <add>, %43, %cst_16 [0] : vector<128x128xf32> to vector<128xf32>
    %45 = vector.shape_cast %44 : vector<128xf32> to vector<1x128xf32>
    %46 = tpu.iota {dimensions = array<i32: 0>} : vector<8x128xi32>
    %c0_i32 = arith.constant 0 : i32
    %47 = vector.broadcast %c0_i32 : i32 to vector<8x128xi32>
    %48 = arith.cmpi eq, %46, %47 : vector<8x128xi32>
    %cst_17 = arith.constant 0.000000e+00 : f32
    %49 = vector.shape_cast %45 : vector<1x128xf32> to vector<1x128xf32>
    %50 = vector.broadcast %49 : vector<1x128xf32> to vector<8x128xf32>
    %51 = vector.broadcast %cst_17 : f32 to vector<8x128xf32>
    %52 = arith.select %48, %50, %51 : vector<8x128xi1>, vector<8x128xf32>
    %c0_18 = arith.constant 0 : index
    %c0_19 = arith.constant 0 : index
    %53 = vector.load %arg5[%c0_18, %c0_19] : memref<8x128xf32, #tpu.memory_space<vmem>>, vector<8x128xf32>
    tpu.vector_store %arg5[%c0_18, %c0_19], %52 {strides = array<i32>} : memref<8x128xf32, #tpu.memory_space<vmem>>, vector<8x128xf32>,
    return
  }
  func.func @transform_0(%arg0: i32) -> (i32, i32) {
    %c0_i32 = arith.constant 0 : i32
    %c0_i32_0 = arith.constant 0 : i32
    %c0_i32_1 = arith.constant 0 : i32
    return %c0_i32, %c0_i32_0 : i32, i32
  }
  func.func @transform_1(%arg0: i32) -> (i32, i32) {
    %c0_i32 = arith.constant 0 : i32
    %c0_i32_0 = arith.constant 0 : i32
    return %arg0, %c0_i32 : i32, i32
  }
  func.func @transform_2(%arg0: i32) -> (i32, i32) {
    %c0_i32 = arith.constant 0 : i32
    %c0_i32_0 = arith.constant 0 : i32
    %c0_i32_1 = arith.constant 0 : i32
    return %c0_i32, %c0_i32_0 : i32, i32
  }
  func.func @transform_3(%arg0: i32) -> (i32, i32) {
    %c0_i32 = arith.constant 0 : i32
    %c0_i32_0 = arith.constant 0 : i32
    return %arg0, %c0_i32 : i32, i32
  }
  func.func @transform_4(%arg0: i32) -> (i32, i32) {
    %c0_i32 = arith.constant 0 : i32
    %c0_i32_0 = arith.constant 0 : i32
    return %arg0, %c0_i32 : i32, i32
  }
}

</mosaic_0001>

<bundles_post_ra>
// kernel: tpu_custom_call.1
= control target key start
LH: loop header
LB: loop body
LE: loop exit
PB: predicated region body
PF: predicated region fallthrough
CT: control target
= control target key end

     0   :  { %s1686_s0 = inlined_call_operand.vmem [shape: bf16[128,128], index: 0, kind: input, shape index: {}]   ;;  %s1687_s1 = inlined_call_operand.vmem [shape: bf16[128,128], index: 1, kind: input, shape index: {}]   ;;  %s1688_s2 = inlined_call_operand.vmem [shape: s32[1,128], index: 2, kind: input, shape index: {}]   ;;  %s1689_s3 = inlined_call_operand.vmem [shape: s32[128,1], index: 3, kind: input, shape index: {}]   ;;  %s1690_s4 = inlined_call_operand.hbm [shape: f32[8,128], index: 4, kind: output, shape index: {}]  }
   0x1   :  { %v834_v0 = vld [vmem:[%s1686_s0 + $0x38] sm:$0xff] }
   0x2   :  { %147 = vmatpush.bf16.xpose.msra.mxu0 %v834_v0  ;;  %835 = vmatpush.bf16.xpose.msra.mxu1 %v834_v0 }
   0x3   :  { %9 = vsyncpa [#allocation3], 0  ;;  %836 = vmatpush.bf16.xpose.msra.mxu2 %v834_v0  ;;  %837 = vmatpush.bf16.xpose.msra.mxu3 %v834_v0  ;;  %v212_v1 = vld [vmem:[%s1689_s3] sm:$0xff]  ;;  %v1020_v2 = vmov 0   ;;  %v833_v3 = vld [vmem:[%s1686_s0 + $0x30] sm:$0xff]  ;;  %v294_v33 = vlaneseq  ;;  %v1715_v47 = vmov 0 }
   0x4   :  { %862 = vset.pattern.permute.xlu0 %v1020_v2  ;;  %863 = vset.pattern.permute.xlu1 %v1020_v2  ;;  %v213_v4 = vld [vmem:[%s1689_s3 + $0x8] sm:$0xff]  ;;  %v218_v6 = vld [vmem:[%s1689_s3 + $0x30] sm:$0xff]  ;;  %v831_v7 = vld [vmem:[%s1686_s0 + $0x20] sm:$0xff]  ;;  %v1721_v58 = vmov 0  ;;  %s746_s29 = sshll.u32 %s1690_s4, 4  ;;  %s747_s29 = int_to_ptr.hbm [resolvable:$true] %s746_s29 }
   0x5   :  { %230 = vperm.xlu0 %862, %v212_v1   ;;  %864 = vset.pattern.permute.xlu2 %v1020_v2  ;;  %v832_v5 = vld [vmem:[%s1686_s0 + $0x28] sm:$0xff]  ;;  %v214_v8 = vld [vmem:[%s1689_s3 + $0x10] sm:$0xff]  ;;  %v830_v10 = vld [vmem:[%s1686_s0 + $0x18] sm:$0xff]  ;;  %v1149_v35 = vand.u32 127, %v294_v33  ;;  %v1151_v36 = vshrl.u32 %v294_v33, 7  ;;  %v1725_v1 = vmov 0 }
   0x6   :  { %v221_v9 = vld [vmem:[%s1689_s3 + $0x48] sm:$0xff]  ;;  %236 = vperm.xlu1 %863, %v214_v8   ;;  %v215_v11 = vld [vmem:[%s1689_s3 + $0x18] sm:$0xff]  ;;  %v224_v12 = vld [vmem:[%s1689_s3 + $0x60] sm:$0xff]  ;;  %v1727_v2 = vmov 0 }
   0x7   :  { %v216_v13 = vld [vmem:[%s1689_s3 + $0x20] sm:$0xff]  ;;  %v829_v14 = vld [vmem:[%s1686_s0 + $0x10] sm:$0xff]  ;;  %v219_v15 = vld [vmem:[%s1689_s3 + $0x38] sm:$0xff]  ;;  %1708 = vst [vmem:[#allocation5_spill] sm:$0xff] %v1151_v36  ;;  %vm330_vm0 = vcmp.ne.s32.totalorder %v1151_v36, %v1149_v35  ;;  %v301_v39 = vadd.s32 32, %v1151_v36  ;;  %v298_v40 = vadd.s32 8, %v1151_v36 }
   0x8   :  { %242 = vperm.xlu2 %864, %v216_v13   ;;  %v227_v16 = vld [vmem:[%s1689_s3 + $0x78] sm:$0xff]  ;;  %v828_v17 = vld [vmem:[%s1686_s0 + $0x8] sm:$0xff]  ;;  %v222_v18 = vld [vmem:[%s1689_s3 + $0x50] sm:$0xff]  ;;  %v303_v45 = vadd.s32 48, %v1151_v36  ;;  %v299_v48 = vadd.s32 16, %v1151_v36  ;;  %v302_v49 = vadd.s32 40, %v1151_v36 }
   0x9   :  { %v217_v19 = vld [vmem:[%s1689_s3 + $0x28] sm:$0xff]  ;;  %v827_v20 = vld [vmem:[%s1686_s0] sm:$0xff]  ;;  %v821_v24 = vld [vmem:[%s1687_s1 + $0x10] sm:$0xff]  ;;  %vm334_vm3 = vcmp.ne.s32.totalorder %v301_v39, %v1149_v35  ;;  %vm331_vm4 = vcmp.ne.s32.totalorder %v298_v40, %v1149_v35  ;;  %v306_v50 = vadd.s32 72, %v1151_v36  ;;  %v300_v55 = vadd.s32 24, %v1151_v36 }
   0xa   :  { %148 = vmatpush.bf16.xpose.msra.mxu0 %v833_v3  ;;  %838 = vmatpush.bf16.xpose.msra.mxu1 %v833_v3  ;;  %v225_v21 = vld [vmem:[%s1689_s3 + $0x68] sm:$0xff]  ;;  %v220_v22 = vld [vmem:[%s1689_s3 + $0x40] sm:$0xff]  ;;  %v825_v26 = vld [vmem:[%s1687_s1 + $0x30] sm:$0xff]  ;;  %vm336_vm9 = vcmp.ne.s32.totalorder %v303_v45, %v1149_v35  ;;  %vm332_vm12 = vcmp.ne.s32.totalorder %v299_v48, %v1149_v35  ;;  %vm335_vm14 = vcmp.ne.s32.totalorder %v302_v49, %v1149_v35  ;;  %v305_v57 = vadd.s32 64, %v1151_v36 }
   0xb   :  { %839 = vmatpush.bf16.xpose.msra.mxu2 %v833_v3  ;;  %840 = vmatpush.bf16.xpose.msra.mxu3 %v833_v3  ;;  %v819_v23 = vld [vmem:[%s1687_s1] sm:$0xff]  ;;  %v223_v27 = vld [vmem:[%s1689_s3 + $0x58] sm:$0xff]  ;;  %v226_v28 = vld [vmem:[%s1689_s3 + $0x70] sm:$0xff]  ;;  %v309_v59 = vadd.s32 96, %v1151_v36  ;;  %v304_v0 = vadd.s32 56, %v1151_v36  ;;  %v1735_v13 = vmov 0 }
   0xc   :  { %v823_v25 = vld [vmem:[%s1687_s1 + $0x20] sm:$0xff]  ;;  %v820_v29 = vld [vmem:[%s1687_s1 + $0x8] sm:$0xff]  ;;  %v822_v30 = vld [vmem:[%s1687_s1 + $0x18] sm:$0xff] }
   0xd   :  { %233 = vperm.xlu0 %862, %v213_v4   ;;  %v824_v31 = vld [vmem:[%s1687_s1 + $0x28] sm:$0xff]  ;;  %v826_v32 = vld [vmem:[%s1687_s1 + $0x38] sm:$0xff]  ;;  %v1147_v34 = vld [vmem:[%s1688_s2] ss:$0 sm:$0xff]  ;;  %v1729_v4 = vmov 0  ;;  %s1022_s1 = smov [#allocation2]  }
   0xe   :  { %239 = vperm.xlu1 %863, %v215_v11   ;;  %v307_v11 = vadd.s32 80, %v1151_v36  ;;  %s744_s2 = sshll.u32 %s1022_s1, 4  ;;  %s745_s2 = int_to_ptr.vmem [resolvable:$true] %s744_s2 }
  0x10   :  { %245 = vperm.xlu2 %864, %v217_v19   ;;  %v1739_v19 = vmov 0 }
  0x12   :  { %149 = vmatpush.bf16.xpose.msra.mxu0 %v832_v5  ;;  %841 = vmatpush.bf16.xpose.msra.mxu1 %v832_v5 }
  0x13   :  { %842 = vmatpush.bf16.xpose.msra.mxu2 %v832_v5  ;;  %843 = vmatpush.bf16.xpose.msra.mxu3 %v832_v5  ;;  %v308_v5 = vadd.s32 88, %v1151_v36 }
  0x15   :  { %248 = vperm.xlu0 %862, %v218_v6  }
  0x16   :  { %251 = vperm.xlu1 %863, %v219_v15  }
  0x18   :  { %254 = vperm.xlu2 %864, %v220_v22  }
  0x1a   :  { %150 = vmatpush.bf16.xpose.msra.mxu0 %v831_v7  ;;  %844 = vmatpush.bf16.xpose.msra.mxu1 %v831_v7 }
  0x1b   :  { %845 = vmatpush.bf16.xpose.msra.mxu2 %v831_v7  ;;  %846 = vmatpush.bf16.xpose.msra.mxu3 %v831_v7  ;;  %v312_v7 = vadd.s32 120, %v1151_v36 }
  0x1d   :  { %257 = vperm.xlu0 %862, %v221_v9   ;;  %v1731_v9 = vmov 0 }
  0x1e   :  { %260 = vperm.xlu1 %863, %v222_v18  }
  0x20   :  { %263 = vperm.xlu2 %864, %v223_v27  }
  0x22   :  { %151 = vmatpush.bf16.xpose.msra.mxu0 %v830_v10  ;;  %847 = vmatpush.bf16.xpose.msra.mxu1 %v830_v10 }
  0x23   :  { %848 = vmatpush.bf16.xpose.msra.mxu2 %v830_v10  ;;  %849 = vmatpush.bf16.xpose.msra.mxu3 %v830_v10  ;;  %v1733_v10 = vmov 0 }
  0x25   :  { %266 = vperm.xlu0 %862, %v224_v12  }
  0x26   :  { %269 = vperm.xlu1 %863, %v225_v21  }
  0x28   :  { %272 = vperm.xlu2 %864, %v226_v28  }
  0x2a   :  { %152 = vmatpush.bf16.xpose.msra.mxu0 %v829_v14  ;;  %850 = vmatpush.bf16.xpose.msra.mxu1 %v829_v14 }
  0x2b   :  { %851 = vmatpush.bf16.xpose.msra.mxu2 %v829_v14  ;;  %852 = vmatpush.bf16.xpose.msra.mxu3 %v829_v14  ;;  %v311_v14 = vadd.s32 112, %v1151_v36 }
  0x2d   :  { %275 = vperm.xlu0 %862, %v227_v16   ;;  %v1737_v16 = vmov 0 }
  0x32   :  { %153 = vmatpush.bf16.xpose.msra.mxu0 %v828_v17  ;;  %853 = vmatpush.bf16.xpose.msra.mxu1 %v828_v17 }
  0x33   :  { %854 = vmatpush.bf16.xpose.msra.mxu2 %v828_v17  ;;  %855 = vmatpush.bf16.xpose.msra.mxu3 %v828_v17  ;;  %v310_v17 = vadd.s32 104, %v1151_v36 }
  0x3a   :  { %154 = vmatpush.bf16.xpose.msra.mxu0 %v827_v20  ;;  %856 = vmatpush.bf16.xpose.msra.mxu1 %v827_v20 }
  0x3b   :  { %857 = vmatpush.bf16.xpose.msra.mxu2 %v827_v20  ;;  %858 = vmatpush.bf16.xpose.msra.mxu3 %v827_v20 }
  0x41   :  { %155 = vmatmul.bf16.vlgmr.msra.gmra.mxu0 %v819_v23  ;;  %165 = vmatmul.bf16.vlgmr.msra.gmra.mxu1 %v821_v24 }
  0x42   :  { %175 = vmatmul.bf16.vlgmr.msra.gmra.mxu2 %v823_v25  ;;  %185 = vmatmul.bf16.vlgmr.msra.gmra.mxu3 %v825_v26 }
  0x51   :  { %160 = vmatmul.bf16.gmra.mxu0 %v820_v29  ;;  %170 = vmatmul.bf16.gmra.mxu1 %v822_v30 }
  0x52   :  { %180 = vmatmul.bf16.gmra.mxu2 %v824_v31  ;;  %190 = vmatmul.bf16.gmra.mxu3 %v826_v32 }
  0x62   :  { %v1170_v41 = vpop.permute.xlu2 %242 }
  0x63   :  { %vm1696_vm5 = vcmp.eq.s32.totalorder %v1170_v41, %v1147_v34 }
  0x64   :  { %vm1181_vm7 = vmand %vm1696_vm5, %vm334_vm3  ;;  %vm339_vm3 = vcmp.ne.s32.totalorder %v306_v50, %v1149_v35 }
  0x6a   :  { %v1211_v52 = vpop.permute.xlu2 %245 }
  0x72   :  { %v1250_v61 = vpop.permute.xlu2 %254 }
  0x77   :  { %v1155_v37 = vpop.permute.xlu0 %230 }
  0x78   :  { %vm1698_vm1 = vcmp.eq.s32.totalorder %v1155_v37, %v1147_v34  ;;  %v1209_v51 = vpop.permute.xlu1 %236 }
  0x79   :  { %vm1162_vm2 = vmand %vm1698_vm1, %vm330_vm0  ;;  %vm1692_vm13 = vcmp.eq.s32.totalorder %v1209_v51, %v1147_v34  ;;  %vm1693_vm0 = vcmp.eq.s32.totalorder %v1211_v52, %v1147_v34 }
  0x7a   :  { %vm1221_vm15 = vmand %vm1692_vm13, %vm332_vm12  ;;  %vm338_vm13 = vcmp.ne.s32.totalorder %v305_v57, %v1149_v35  ;;  %v1297_v6 = vpop.permute.xlu2 %263 }
  0x7f   :  { %v1172_v42 = vpop.permute.xlu0 %233 }
  0x80   :  { %vm1695_vm6 = vcmp.eq.s32.totalorder %v1172_v42, %v1147_v34  ;;  %v1248_v60 = vpop.permute.xlu1 %239 }
  0x81   :  { %vm1188_vm8 = vmand %vm1695_vm6, %vm331_vm4 }
  0x82   :  { %v1336_v15 = vpop.permute.xlu2 %272 }
  0x87   :  { %v1194_v46 = vpop.permute.xlu0 %248 }
  0x88   :  { %vm1691_vm10 = vcmp.eq.s32.totalorder %v1194_v46, %v1147_v34  ;;  %v1285_v3 = vpop.permute.xlu1 %251 }
  0x89   :  { %vm1201_vm11 = vmand %vm1691_vm10, %vm336_vm9  ;;  %vm333_vm10 = vcmp.ne.s32.totalorder %v300_v55, %v1149_v35  ;;  %vm1701_vm1 = vcmp.eq.s32.totalorder %v1285_v3, %v1147_v34 }
  0x8a   :  { %v1716_v47 = vsel %vm1201_vm11, 4294967295, %v1715_v47  ;;  %vm1234_vm9 = vmand %vm1693_vm0, %vm335_vm14  ;;  %vm1697_vm14 = vcmp.eq.s32.totalorder %v1248_v60, %v1147_v34  ;;  %vm1700_vm0 = vcmp.eq.s32.totalorder %v1250_v61, %v1147_v34 }
  0x8b   :  { %vm1273_vm5 = vmand %vm1700_vm0, %vm338_vm13  ;;  %vm341_vm0 = vcmp.ne.s32.totalorder %v308_v5, %v1149_v35 }
  0x8c   :  { %v1726_v1 = vsel %vm1273_vm5, 4294967295, %v1725_v1  ;;  %vm340_vm5 = vcmp.ne.s32.totalorder %v307_v11, %v1149_v35 }
  0x8f   :  { %v1216_v53 = vpop.permute.xlu0 %257 }
  0x90   :  { %vm1694_vm4 = vcmp.eq.s32.totalorder %v1216_v53, %v1147_v34  ;;  %v1323_v12 = vpop.permute.xlu1 %260 }
  0x91   :  { %vm1242_vm12 = vmand %vm1694_vm4, %vm339_vm3  ;;  %vm342_vm4 = vcmp.ne.s32.totalorder %v309_v59, %v1149_v35 }
  0x92   :  { %v1722_v58 = vsel %vm1242_vm12, 4294967295, %v1721_v58  ;;  %vm1260_vm3 = vmand %vm1697_vm14, %vm333_vm10  ;;  %vm337_vm14 = vcmp.ne.s32.totalorder %v304_v0, %v1149_v35  ;;  %vm1704_vm12 = vcmp.eq.s32.totalorder %v1323_v12, %v1147_v34 }
  0x93   :  { %vm1292_vm13 = vmand %vm1701_vm1, %vm337_vm14  ;;  %vm345_vm14 = vcmp.ne.s32.totalorder %v312_v7, %v1149_v35 }
  0x94   :  { %v1730_v4 = vsel %vm1292_vm13, 4294967295, %v1729_v4 }
  0x97   :  { %v1264_v63 = vpop.permute.xlu0 %266 }
  0x98   :  { %vm1699_vm6 = vcmp.eq.s32.totalorder %v1264_v63, %v1147_v34  ;;  %v1349_v18 = vpop.permute.xlu1 %269 }
  0x99   :  { %vm1280_vm10 = vmand %vm1699_vm6, %vm342_vm4  ;;  %vm1703_vm4 = vcmp.eq.s32.totalorder %v1297_v6, %v1147_v34 }
  0x9a   :  { %v1728_v2 = vsel %vm1280_vm10, 4294967295, %v1727_v2  ;;  %vm1311_vm1 = vmand %vm1703_vm4, %vm341_vm0 }
  0x9b   :  { %v1732_v9 = vsel %vm1311_vm1, 4294967295, %v1731_v9  ;;  %vm1331_vm0 = vmand %vm1704_vm12, %vm340_vm5  ;;  %vm343_vm5 = vcmp.ne.s32.totalorder %v310_v17, %v1149_v35  ;;  %vm1706_vm12 = vcmp.eq.s32.totalorder %v1349_v18, %v1147_v34  ;;  %vm378_vm1 = vcmp.lt.s32.totalorder %v1149_v35, 16 }
  0x9c   :  { %v1736_v13 = vsel %vm1331_vm0, 4294967295, %v1735_v13 }
  0x9f   :  { %v1300_v8 = vpop.permute.xlu0 %275 }
  0xa0   :  { %vm1702_vm6 = vcmp.eq.s32.totalorder %v1300_v8, %v1147_v34 }
  0xa1   :  { %vm1318_vm10 = vmand %vm1702_vm6, %vm345_vm14  ;;  %vm1705_vm14 = vcmp.eq.s32.totalorder %v1336_v15, %v1147_v34  ;;  %vm344_vm6 = vcmp.ne.s32.totalorder %v311_v14, %v1149_v35 }
  0xa2   :  { %v1734_v10 = vsel %vm1318_vm10, 4294967295, %v1733_v10  ;;  %vm1344_vm4 = vmand %vm1705_vm14, %vm344_vm6  ;;  %vm1021_vm6 = vmmov 1   ;;  %vm1741_vm14 = vcmp.eq.s32.totalorder %v1155_v37, %v1147_v34 }
  0xa3   :  { %v1738_v16 = vsel %vm1344_vm4, 4294967295, %v1737_v16  ;;  %vm1357_vm10 = vmand %vm1706_vm12, %vm343_vm5  ;;  %vm1742_vm5 = vcmp.eq.s32.totalorder %v1170_v41, %v1147_v34 }
  0xa4   :  { %v1740_v19 = vsel %vm1357_vm10, 4294967295, %v1739_v19  ;;  %vm362_vm4 = vmxor %vm1741_vm14, %vm1021_vm6 }
  0xa5   :  { %vm379_vm0 = vmand %vm362_vm4, %vm378_vm1  ;;  %vm1743_vm4 = vcmp.eq.s32.totalorder %v1172_v42, %v1147_v34 }
  0xa6   :  { %vm366_vm12 = vmxor %vm1742_vm5, %vm1021_vm6 }
  0xa7   :  { %vm383_vm14 = vmand %vm366_vm12, %vm378_vm1  ;;  %vm1744_vm12 = vcmp.eq.s32.totalorder %v1211_v52, %v1147_v34 }
  0xa8   :  { %vm363_vm10 = vmxor %vm1743_vm4, %vm1021_vm6 }
  0xa9   :  { %vm367_vm5 = vmxor %vm1744_vm12, %vm1021_vm6  ;;  %vm1746_vm12 = vcmp.eq.s32.totalorder %v1194_v46, %v1147_v34 }
  0xbe   :  { %v156_v20 = vpop.f32.mrf.mxu0  ;;  %v166_v21 = vpop.f32.mrf.mxu1 }
  0xbf   :  { %v1368_v22 = vmul.f32 25.0, %v156_v20  ;;  %v1378_v24 = vmul.f32 25.0, %v166_v21 }
  0xc1   :  { %v1375_v23 = vsel %vm379_vm0, %v1368_v22, -1e+30  ;;  %v1389_v29 = vsel %vm383_vm14, %v1378_v24, -1e+30  ;;  %vm380_vm0 = vmand %vm363_vm10, %vm378_vm1  ;;  %vm1745_vm14 = vcmp.eq.s32.totalorder %v1209_v51, %v1147_v34 }
  0xc2   :  { %411 = vmax.xlane.f32.xlu1 %v1375_v23  ;;  %vm364_vm4 = vmxor %vm1745_vm14, %vm1021_vm6  ;;  %vm1747_vm14 = vcmp.eq.s32.totalorder %v1285_v3, %v1147_v34 }
  0xc3   :  { %vm384_vm10 = vmand %vm367_vm5, %vm378_vm1 }
  0xc4   :  { %vm368_vm5 = vmxor %vm1746_vm12, %vm1021_vm6 }
  0xc5   :  { %v176_v25 = vpop.f32.mrf.mxu2  ;;  %v186_v31 = vpop.f32.mrf.mxu3  ;;  %vm385_vm13 = vmand %vm368_vm5, %vm378_vm1  ;;  %vm1749_vm5 = vcmp.eq.s32.totalorder %v1323_v12, %v1147_v34 }
  0xc6   :  { %v158_v26 = vpop.f32.mrf.mxu0  ;;  %v168_v27 = vpop.f32.mrf.mxu1  ;;  %v1474_v3 = vmul.f32 25.0, %v176_v25  ;;  %v1506_v12 = vmul.f32 25.0, %v186_v31 }
  0xc7   :  { %v1386_v28 = vmul.f32 25.0, %v158_v26  ;;  %v1406_v32 = vmul.f32 25.0, %v168_v27 }
  0xc9   :  { %v1394_v30 = vsel %vm380_vm0, %v1386_v28, -1e+30  ;;  %vm381_vm0 = vmand %vm364_vm4, %vm378_vm1  ;;  %v1415_v41 = vsel %vm384_vm10, %v1406_v32, -1e+30  ;;  %vm1748_vm10 = vcmp.eq.s32.totalorder %v1248_v60, %v1147_v34 }
  0xca   :  { %419 = vmax.xlane.f32.xlu1 %v1389_v29  ;;  %413 = vmax.xlane.f32.xlu2 %v1394_v30  ;;  %vm369_vm4 = vmxor %vm1747_vm14, %vm1021_vm6 }
  0xcb   :  { %vm386_vm12 = vmand %vm369_vm4, %vm378_vm1 }
  0xcc   :  { %vm372_vm4 = vmxor %vm1749_vm5, %vm1021_vm6 }
  0xcd   :  { %v178_v39 = vpop.f32.mrf.mxu2  ;;  %v188_v45 = vpop.f32.mrf.mxu3 }
  0xce   :  { %v161_v33 = vpop.f32.mrf.mxu0  ;;  %v171_v37 = vpop.f32.mrf.mxu1  ;;  %v1470_v60 = vmul.f32 25.0, %v178_v39  ;;  %v1508_v14 = vmul.f32 25.0, %v188_v45 }
  0xcf   :  { %v1412_v40 = vmul.f32 25.0, %v161_v33  ;;  %v1434_v48 = vmul.f32 25.0, %v171_v37 }
  0xd1   :  { %v1418_v42 = vsel %vm381_vm0, %v1412_v40, -1e+30  ;;  %vm365_vm0 = vmxor %vm1748_vm10, %vm1021_vm6  ;;  %v1450_v57 = vsel %vm385_vm13, %v1434_v48, -1e+30  ;;  %vm1750_vm10 = vcmp.eq.s32.totalorder %v1250_v61, %v1147_v34 }
  0xd2   :  { %421 = vmax.xlane.f32.xlu2 %v1415_v41  ;;  %415 = vmax.xlane.f32.xlu0 %v1418_v42  ;;  %vm382_vm14 = vmand %vm365_vm0, %vm378_vm1  ;;  %vm1751_vm0 = vcmp.eq.s32.totalorder %v1216_v53, %v1147_v34 }
  0xd3   :  { %vm370_vm13 = vmxor %vm1750_vm10, %vm1021_vm6 }
  0xd4   :  { %vm387_vm5 = vmand %vm370_vm13, %vm378_vm1 }
  0xd5   :  { %v181_v52 = vpop.f32.mrf.mxu2  ;;  %v191_v5 = vpop.f32.mrf.mxu3  ;;  %v1495_v7 = vsel %vm387_vm5, %v1474_v3, -1e+30 }
  0xd6   :  { %v163_v49 = vpop.f32.mrf.mxu0  ;;  %v173_v50 = vpop.f32.mrf.mxu1  ;;  %v1472_v0 = vmul.f32 25.0, %v181_v52  ;;  %v1540_v25 = vmul.f32 25.0, %v191_v5 }
  0xd7   :  { %v1438_v46 = vmul.f32 25.0, %v163_v49  ;;  %v1440_v51 = vmul.f32 25.0, %v173_v50 }
  0xd9   :  { %v1447_v55 = vsel %vm386_vm12, %v1440_v51, -1e+30  ;;  %v1453_v59 = vsel %vm382_vm14, %v1438_v46, -1e+30  ;;  %vm371_vm12 = vmxor %vm1751_vm0, %vm1021_vm6  ;;  %vm1752_vm0 = vcmp.eq.s32.totalorder %v1349_v18, %v1147_v34 }
  0xda   :  { %425 = vmax.xlane.f32.xlu1 %v1447_v55  ;;  %423 = vmax.xlane.f32.xlu0 %v1450_v57  ;;  %vm389_vm14 = vmand %vm372_vm4, %vm378_vm1  ;;  %vm1753_vm4 = vcmp.eq.s32.totalorder %v1264_v63, %v1147_v34 }
  0xdb   :  { %417 = vmax.xlane.f32.xlu2 %v1453_v59  ;;  %vm388_vm10 = vmand %vm371_vm12, %vm378_vm1  ;;  %v1483_v61 = vsel %vm389_vm14, %v1472_v0, -1e+30  ;;  %vm1754_vm12 = vcmp.eq.s32.totalorder %v1297_v6, %v1147_v34 }
  0xdc   :  { %v1486_v53 = vsel %vm388_vm10, %v1470_v60, -1e+30  ;;  %vm375_vm11 = vmxor %vm1752_vm0, %vm1021_vm6 }
  0xdd   :  { %vm374_vm13 = vmxor %vm1753_vm4, %vm1021_vm6  ;;  %v183_v11 = vpop.f32.mrf.mxu2  ;;  %v193_v6 = vpop.f32.mrf.mxu3 }
  0xde   :  { %vm373_vm14 = vmxor %vm1754_vm12, %vm1021_vm6  ;;  %v1512_v17 = vmul.f32 25.0, %v183_v11  ;;  %v1534_v21 = vmul.f32 25.0, %v193_v6 }
  0xdf   :  { %vm392_vm5 = vmand %vm375_vm11, %vm378_vm1  ;;  %vm1755_vm11 = vcmp.eq.s32.totalorder %v1300_v8, %v1147_v34 }
  0xe0   :  { %vm391_vm10 = vmand %vm374_vm13, %vm378_vm1  ;;  %v1517_v63 = vsel %vm392_vm5, %v1508_v14, -1e+30  ;;  %vm1756_vm13 = vcmp.eq.s32.totalorder %v1336_v15, %v1147_v34 }
  0xe1   :  { %v1520_v18 = vsel %vm391_vm10, %v1506_v12, -1e+30  ;;  %vm390_vm0 = vmand %vm373_vm14, %vm378_vm1 }
  0xe2   :  { %431 = vmax.xlane.f32.xlu1 %v1483_v61  ;;  %429 = vmax.xlane.f32.xlu0 %v1486_v53  ;;  %v1527_v20 = vsel %vm390_vm0, %v1512_v17, -1e+30  ;;  %vm377_vm4 = vmxor %vm1755_vm11, %vm1021_vm6 }
  0xe3   :  { %427 = vmax.xlane.f32.xlu2 %v1495_v7  ;;  %vm376_vm12 = vmxor %vm1756_vm13, %vm1021_vm6 }
  0xe4   :  { %vm394_vm14 = vmand %vm377_vm4, %vm378_vm1 }
  0xe5   :  { %v1545_v26 = vsel %vm394_vm14, %v1534_v21, -1e+30  ;;  %vm393_vm5 = vmand %vm376_vm12, %vm378_vm1 }
  0xe6   :  { %v1551_v8 = vsel %vm393_vm5, %v1540_v25, -1e+30 }
  0xea   :  { %437 = vmax.xlane.f32.xlu1 %v1517_v63  ;;  %435 = vmax.xlane.f32.xlu0 %v1520_v18 }
  0xeb   :  { %433 = vmax.xlane.f32.xlu2 %v1527_v20 }
  0xf2   :  { %441 = vmax.xlane.f32.xlu0 %v1545_v26 }
  0xf3   :  { %439 = vmax.xlane.f32.xlu2 %v1551_v8 }
 0x135   :  { %v412_v34 = vpop.xlane.xlu1 %411 }
 0x136   :  { %vm443_vm6 = vcmp.lt.f32.partialorder %v412_v34, -5e+29 }
 0x137   :  { %v1554_v15 = vsel %vm443_vm6, 0.0, %v412_v34 }
 0x138   :  { %v475_v27 = vsub.f32 %v1375_v23, %v1554_v15 }
 0x13a   :  { %v491_v31 = vmul.f32 1.442695, %v475_v27 }
 0x13c   :  { %866 = vpow2.f32 %v491_v31 }
 0x13d   :  { %v420_v33 = vpop.xlane.xlu1 %419  ;;  %v414_v37 = vpop.xlane.xlu2 %413 }
 0x13e   :  { %vm447_vm10 = vcmp.lt.f32.partialorder %v420_v33, -5e+29  ;;  %vm444_vm1 = vcmp.lt.f32.partialorder %v414_v37, -5e+29 }
 0x13f   :  { %v1558_v35 = vsel %vm447_vm10, 0.0, %v420_v33  ;;  %v1562_v45 = vsel %vm444_vm1, 0.0, %v414_v37 }
 0x140   :  { %v479_v39 = vsub.f32 %v1389_v29, %v1558_v35  ;;  %v476_v52 = vsub.f32 %v1394_v30, %v1562_v45 }
 0x142   :  { %v867_v49 = vpop.eup %866  ;;  %v499_v50 = vmul.f32 1.442695, %v479_v39  ;;  %v493_v11 = vmul.f32 1.442695, %v476_v52 }
 0x143   :  { %523 = vadd.xlane.f32.xlu1 %v867_v49 }
 0x144   :  { %868 = vpow2.f32 %v499_v50 }
 0x145   :  { %v422_v23 = vpop.xlane.xlu2 %421  ;;  %v416_v5 = vpop.xlane.xlu0 %415  ;;  %870 = vpow2.f32 %v493_v11 }
 0x146   :  { %vm448_vm0 = vcmp.lt.f32.partialorder %v422_v23, -5e+29  ;;  %vm445_vm11 = vcmp.lt.f32.partialorder %v416_v5, -5e+29 }
 0x147   :  { %v1566_v6 = vsel %vm448_vm0, 0.0, %v422_v23  ;;  %v1570_v29 = vsel %vm445_vm11, 0.0, %v416_v5 }
 0x148   :  { %v480_v34 = vsub.f32 %v1415_v41, %v1566_v6  ;;  %v477_v30 = vsub.f32 %v1418_v42, %v1570_v29 }
 0x14a   :  { %v869_v27 = vpop.eup %868  ;;  %v501_v31 = vmul.f32 1.442695, %v480_v34  ;;  %v495_v49 = vmul.f32 1.442695, %v477_v30 }
 0x14b   :  { %531 = vadd.xlane.f32.xlu2 %v869_v27  ;;  %v871_v42 = vpop.eup %870 }
 0x14c   :  { %872 = vpow2.f32 %v501_v31 }
 0x14d   :  { %v426_v33 = vpop.xlane.xlu1 %425  ;;  %v424_v37 = vpop.xlane.xlu0 %423  ;;  %874 = vpow2.f32 %v495_v49 }
 0x14e   :  { %vm450_vm4 = vcmp.lt.f32.partialorder %v426_v33, -5e+29  ;;  %vm449_vm13 = vcmp.lt.f32.partialorder %v424_v37, -5e+29  ;;  %v418_v39 = vpop.xlane.xlu2 %417 }
 0x14f   :  { %v1574_v50 = vsel %vm450_vm4, 0.0, %v426_v33  ;;  %v1576_v52 = vsel %vm449_vm13, 0.0, %v424_v37  ;;  %vm446_vm12 = vcmp.lt.f32.partialorder %v418_v39, -5e+29  ;;  %vm1763_vm13 = vnez %v1728_v2 }
 0x150   :  { %v482_v41 = vsub.f32 %v1447_v55, %v1574_v50  ;;  %v481_v23 = vsub.f32 %v1450_v57, %v1576_v52  ;;  %v1582_v27 = vsel %vm446_vm12, 0.0, %v418_v39  ;;  %vm1764_vm12 = vnez %v1740_v19  ;;  %v1767_v19 = vld [vmem:[#allocation5_spill] sm:$0xff] }
 0x151   :  { %v478_v31 = vsub.f32 %v1453_v59, %v1582_v27 }
 0x152   :  { %v873_v5 = vpop.eup %872  ;;  %v505_v11 = vmul.f32 1.442695, %v482_v41  ;;  %v503_v34 = vmul.f32 1.442695, %v481_v23 }
 0x153   :  { %533 = vadd.xlane.f32.xlu0 %v873_v5  ;;  %525 = vadd.xlane.f32.xlu2 %v871_v42  ;;  %v875_v49 = vpop.eup %874  ;;  %v497_v41 = vmul.f32 1.442695, %v478_v31 }
 0x154   :  { %876 = vpow2.f32 %v505_v11 }
 0x155   :  { %878 = vpow2.f32 %v503_v34  ;;  %v432_v30 = vpop.xlane.xlu1 %431  ;;  %v430_v33 = vpop.xlane.xlu0 %429 }
 0x156   :  { %vm453_vm14 = vcmp.lt.f32.partialorder %v432_v30, -5e+29  ;;  %v428_v55 = vpop.xlane.xlu2 %427  ;;  %vm452_vm5 = vcmp.lt.f32.partialorder %v430_v33, -5e+29 }
 0x157   :  { %v1586_v37 = vsel %vm453_vm14, 0.0, %v432_v30  ;;  %vm451_vm6 = vcmp.lt.f32.partialorder %v428_v55, -5e+29  ;;  %v1594_v5 = vsel %vm452_vm5, 0.0, %v430_v33  ;;  %vm1765_vm14 = vnez %v1738_v16 }
 0x158   :  { %v485_v57 = vsub.f32 %v1483_v61, %v1586_v37  ;;  %v1590_v39 = vsel %vm451_vm6, 0.0, %v428_v55  ;;  %v484_v61 = vsub.f32 %v1486_v53, %v1594_v5  ;;  %vm1766_vm5 = vnez %v1734_v10 }
 0x159   :  { %v483_v23 = vsub.f32 %v1495_v7, %v1590_v39  ;;  %vm736_vm6 = vcmp.eq.s32.totalorder %v1767_v19, 0 }
 0x15a   :  { %v877_v42 = vpop.eup %876  ;;  %v511_v59 = vmul.f32 1.442695, %v485_v57 }
 0x15b   :  { %v879_v11 = vpop.eup %878  ;;  %v507_v34 = vmul.f32 1.442695, %v483_v23  ;;  %527 = vadd.xlane.f32.xlu0 %v875_v49  ;;  %537 = vadd.xlane.f32.xlu2 %v877_v42  ;;  %v509_v49 = vmul.f32 1.442695, %v484_v61 }
 0x15c   :  { %880 = vpow2.f32 %v511_v59  ;;  %535 = vadd.xlane.f32.xlu1 %v879_v11 }
 0x15d   :  { %882 = vpow2.f32 %v497_v41  ;;  %v438_v30 = vpop.xlane.xlu1 %437  ;;  %v436_v55 = vpop.xlane.xlu0 %435 }
 0x15e   :  { %884 = vpow2.f32 %v507_v34  ;;  %vm456_vm10 = vcmp.lt.f32.partialorder %v438_v30, -5e+29  ;;  %vm455_vm1 = vcmp.lt.f32.partialorder %v436_v55, -5e+29  ;;  %v434_v7 = vpop.xlane.xlu2 %433 }
 0x15f   :  { %v1598_v31 = vsel %vm456_vm10, 0.0, %v438_v30  ;;  %vm454_vm0 = vcmp.lt.f32.partialorder %v434_v7, -5e+29  ;;  %v1604_v23 = vsel %vm455_vm1, 0.0, %v436_v55 }
 0x160   :  { %v488_v33 = vsub.f32 %v1517_v63, %v1598_v31  ;;  %v1602_v57 = vsel %vm454_vm0, 0.0, %v434_v7  ;;  %v487_v30 = vsub.f32 %v1520_v18, %v1604_v23 }
 0x161   :  { %v486_v53 = vsub.f32 %v1527_v20, %v1602_v57 }
 0x162   :  { %v881_v41 = vpop.eup %880  ;;  %v517_v42 = vmul.f32 1.442695, %v488_v33  ;;  %v515_v55 = vmul.f32 1.442695, %v487_v30 }
 0x163   :  { %v883_v59 = vpop.eup %882  ;;  %v513_v11 = vmul.f32 1.442695, %v486_v53  ;;  %543 = vadd.xlane.f32.xlu2 %v881_v41 }
 0x164   :  { %v885_v34 = vpop.eup %884  ;;  %886 = vpow2.f32 %v517_v42  ;;  %529 = vadd.xlane.f32.xlu1 %v883_v59 }
 0x165   :  { %888 = vpow2.f32 %v509_v49  ;;  %539 = vadd.xlane.f32.xlu0 %v885_v34  ;;  %v442_v63 = vpop.xlane.xlu0 %441 }
 0x166   :  { %890 = vpow2.f32 %v513_v11  ;;  %v440_v61 = vpop.xlane.xlu2 %439  ;;  %vm458_vm11 = vcmp.lt.f32.partialorder %v442_v63, -5e+29 }
 0x167   :  { %vm457_vm4 = vcmp.lt.f32.partialorder %v440_v61, -5e+29  ;;  %v1614_v53 = vsel %vm458_vm11, 0.0, %v442_v63  ;;  %892 = vpow2.f32 %v515_v55 }
 0x168   :  { %v1610_v20 = vsel %vm457_vm4, 0.0, %v440_v61  ;;  %v490_v49 = vsub.f32 %v1545_v26, %v1614_v53 }
 0x169   :  { %v489_v7 = vsub.f32 %v1551_v8, %v1610_v20 }
 0x16a   :  { %v887_v33 = vpop.eup %886  ;;  %v521_v59 = vmul.f32 1.442695, %v490_v49 }
 0x16b   :  { %v889_v41 = vpop.eup %888  ;;  %v519_v42 = vmul.f32 1.442695, %v489_v7  ;;  %549 = vadd.xlane.f32.xlu2 %v887_v33 }
 0x16c   :  { %v891_v18 = vpop.eup %890  ;;  %541 = vadd.xlane.f32.xlu1 %v889_v41 }
 0x16d   :  { %894 = vpow2.f32 %v519_v42  ;;  %545 = vadd.xlane.f32.xlu0 %v891_v18  ;;  %v893_v11 = vpop.eup %892 }
 0x16e   :  { %896 = vpow2.f32 %v521_v59 }
 0x173   :  { %v895_v34 = vpop.eup %894 }
 0x174   :  { %547 = vadd.xlane.f32.xlu1 %v893_v11  ;;  %v897_v8 = vpop.eup %896 }
 0x175   :  { %551 = vadd.xlane.f32.xlu0 %v895_v34 }
 0x17c   :  { %553 = vadd.xlane.f32.xlu1 %v897_v8 }
 0x1b6   :  { %v524_v30 = vpop.xlane.xlu1 %523 }
 0x1b7   :  { %898 = vlog2.f32 %v524_v30 }
 0x1bd   :  { %v899_v63 = vpop.eup %898 }
 0x1be   :  { %v532_v61 = vpop.xlane.xlu2 %531  ;;  %v556_v7 = vmul.f32 0.6931472, %v899_v63 }
 0x1bf   :  { %900 = vlog2.f32 %v532_v61 }
 0x1c0   :  { %v587_v55 = vadd.f32 %v556_v7, %v1554_v15 }
 0x1c2   :  { %v603_v41 = vsub.f32 %v587_v55, %v1368_v22 }
 0x1c4   :  { %v619_v18 = vmul.f32 1.442695, %v603_v41 }
 0x1c5   :  { %v901_v42 = vpop.eup %900 }
 0x1c6   :  { %v534_v33 = vpop.xlane.xlu0 %533  ;;  %v526_v26 = vpop.xlane.xlu2 %525  ;;  %v564_v49 = vmul.f32 0.6931472, %v901_v42 }
 0x1c7   :  { %902 = vlog2.f32 %v534_v33 }
 0x1c8   :  { %904 = vlog2.f32 %v526_v26  ;;  %v591_v15 = vadd.f32 %v564_v49, %v1558_v35 }
 0x1c9   :  { %906 = vpow2.f32 %v619_v18 }
 0x1ca   :  { %v607_v55 = vsub.f32 %v591_v15, %v1378_v24 }
 0x1cc   :  { %v627_v49 = vmul.f32 1.442695, %v607_v55 }
 0x1cd   :  { %v903_v59 = vpop.eup %902 }
 0x1ce   :  { %v905_v11 = vpop.eup %904  ;;  %v528_v34 = vpop.xlane.xlu0 %527  ;;  %v566_v30 = vmul.f32 0.6931472, %v903_v59 }
 0x1cf   :  { %v538_v8 = vpop.xlane.xlu2 %537  ;;  %v558_v36 = vmul.f32 0.6931472, %v905_v11  ;;  %v536_v63 = vpop.xlane.xlu1 %535 }
 0x1d0   :  { %908 = vlog2.f32 %v536_v63  ;;  %v592_v22 = vadd.f32 %v566_v30, %v1566_v6  ;;  %v907_v33 = vpop.eup %906 }
 0x1d1   :  { %v588_v61 = vadd.f32 %v558_v36, %v1562_v45  ;;  %910 = vlog2.f32 %v528_v34 }
 0x1d2   :  { %912 = vlog2.f32 %v538_v8  ;;  %v608_v18 = vsub.f32 %v592_v22, %v1406_v32  ;;  %v651_v8 = vadd.f32 1.0, %v907_v33 }
 0x1d3   :  { %v604_v7 = vsub.f32 %v588_v61, %v1386_v28 }
 0x1d4   :  { %v629_v30 = vmul.f32 1.442695, %v608_v18 }
 0x1d5   :  { %v621_v26 = vmul.f32 1.442695, %v604_v7 }
 0x1d6   :  { %v909_v41 = vpop.eup %908 }
 0x1d7   :  { %v911_v42 = vpop.eup %910  ;;  %v568_v59 = vmul.f32 0.6931472, %v909_v41  ;;  %v530_v11 = vpop.xlane.xlu1 %529  ;;  %914 = vpow2.f32 %v621_v26 }
 0x1d8   :  { %v913_v35 = vpop.eup %912  ;;  %v560_v36 = vmul.f32 0.6931472, %v911_v42  ;;  %v540_v45 = vpop.xlane.xlu0 %539  ;;  %916 = vlog2.f32 %v530_v11 }
 0x1d9   :  { %v544_v34 = vpop.xlane.xlu2 %543  ;;  %v593_v6 = vadd.f32 %v568_v59, %v1576_v52  ;;  %v570_v28 = vmul.f32 0.6931472, %v913_v35  ;;  %918 = vlog2.f32 %v540_v45 }
 0x1da   :  { %v589_v24 = vadd.f32 %v560_v36, %v1570_v29  ;;  %920 = vlog2.f32 %v544_v34 }
 0x1db   :  { %v609_v63 = vsub.f32 %v593_v6, %v1434_v48  ;;  %v594_v32 = vadd.f32 %v570_v28, %v1574_v50  ;;  %922 = vpow2.f32 %v627_v49 }
 0x1dc   :  { %v605_v15 = vsub.f32 %v589_v24, %v1412_v40  ;;  %924 = vlog2.f32 %v651_v8 }
 0x1dd   :  { %v631_v61 = vmul.f32 1.442695, %v609_v63  ;;  %v610_v22 = vsub.f32 %v594_v32, %v1440_v51  ;;  %v915_v7 = vpop.eup %914  ;;  %926 = vpow2.f32 %v629_v30 }
 0x1de   :  { %v623_v52 = vmul.f32 1.442695, %v605_v15  ;;  %v917_v55 = vpop.eup %916  ;;  %v652_v33 = vadd.f32 1.0, %v915_v7 }
 0x1df   :  { %v633_v29 = vmul.f32 1.442695, %v610_v22  ;;  %v542_v26 = vpop.xlane.xlu1 %541  ;;  %v919_v41 = vpop.eup %918  ;;  %928 = vpow2.f32 %v631_v61  ;;  %v562_v48 = vmul.f32 0.6931472, %v917_v55 }
 0x1e0   :  { %v921_v42 = vpop.eup %920  ;;  %930 = vlog2.f32 %v652_v33  ;;  %v572_v50 = vmul.f32 0.6931472, %v919_v41  ;;  %v546_v11 = vpop.xlane.xlu0 %545 }
 0x1e1   :  { %v923_v18 = vpop.eup %922  ;;  %932 = vpow2.f32 %v623_v52  ;;  %v590_v40 = vadd.f32 %v562_v48, %v1582_v27  ;;  %v576_v59 = vmul.f32 0.6931472, %v921_v42  ;;  %v550_v49 = vpop.xlane.xlu2 %549 }
 0x1e2   :  { %v925_v51 = vpop.eup %924  ;;  %934 = vpow2.f32 %v633_v29  ;;  %v595_v35 = vadd.f32 %v572_v50, %v1590_v39  ;;  %v655_v8 = vadd.f32 1.0, %v923_v18 }
 0x1e3   :  { %v606_v36 = vsub.f32 %v590_v40, %v1438_v46  ;;  %v597_v45 = vadd.f32 %v576_v59, %v1586_v37  ;;  %936 = vlog2.f32 %v542_v26  ;;  %v927_v34 = vpop.eup %926  ;;  %v668_v24 = vmul.f32 0.6931472, %v925_v51 }
 0x1e4   :  { %v611_v6 = vsub.f32 %v595_v35, %v1474_v3  ;;  %938 = vlog2.f32 %v546_v11  ;;  %v656_v61 = vadd.f32 1.0, %v927_v34 }
 0x1e5   :  { %v929_v28 = vpop.eup %928  ;;  %v625_v27 = vmul.f32 1.442695, %v606_v36  ;;  %v613_v30 = vsub.f32 %v597_v45, %v1472_v0  ;;  %940 = vlog2.f32 %v550_v49  ;;  %v699_v3 = vsel %vm1162_vm2, %v668_v24, 0.0 }
 0x1e6   :  { %v931_v63 = vpop.eup %930  ;;  %v635_v32 = vmul.f32 1.442695, %v611_v6  ;;  %v657_v40 = vadd.f32 1.0, %v929_v28  ;;  %vm1757_vm2 = vnez %v1716_v47 }
 0x1e7   :  { %v548_v39 = vpop.xlane.xlu1 %547  ;;  %v933_v15 = vpop.eup %932  ;;  %v670_v46 = vmul.f32 0.6931472, %v931_v63  ;;  %942 = vpow2.f32 %v625_v27  ;;  %v639_v7 = vmul.f32 1.442695, %v613_v30 }
 0x1e8   :  { %v935_v37 = vpop.eup %934  ;;  %944 = vlog2.f32 %v655_v8  ;;  %v653_v22 = vadd.f32 1.0, %v933_v15  ;;  %v552_v48 = vpop.xlane.xlu0 %551 }
 0x1e9   :  { %v937_v52 = vpop.eup %936  ;;  %v700_v55 = vsel %vm1188_vm8, %v670_v46, 0.0  ;;  %946 = vpow2.f32 %v635_v32  ;;  %v658_v38 = vadd.f32 1.0, %v935_v37  ;;  %vm1759_vm8 = vnez %v1726_v1 }
 0x1ea   :  { %v939_v0 = vpop.eup %938  ;;  %v715_v33 = vadd.f32 %v700_v55, %v699_v3  ;;  %948 = vlog2.f32 %v653_v22  ;;  %v574_v29 = vmul.f32 0.6931472, %v937_v52 }
 0x1eb   :  { %v941_v26 = vpop.eup %940  ;;  %950 = vlog2.f32 %v656_v61  ;;  %v578_v41 = vmul.f32 0.6931472, %v939_v0 }
 0x1ec   :  { %952 = vpow2.f32 %v639_v7  ;;  %v596_v42 = vadd.f32 %v574_v29, %v1594_v5  ;;  %v582_v50 = vmul.f32 0.6931472, %v941_v26 }
 0x1ed   :  { %v943_v18 = vpop.eup %942  ;;  %v598_v59 = vadd.f32 %v578_v41, %v1602_v57  ;;  %954 = vlog2.f32 %v548_v39 }
 0x1ee   :  { %v945_v44 = vpop.eup %944  ;;  %v654_v11 = vadd.f32 1.0, %v943_v18  ;;  %v612_v51 = vsub.f32 %v596_v42, %v1470_v60  ;;  %v600_v35 = vadd.f32 %v582_v50, %v1598_v31  ;;  %956 = vlog2.f32 %v552_v48 }
 0x1ef   :  { %v554_v49 = vpop.xlane.xlu1 %553  ;;  %v947_v36 = vpop.eup %946  ;;  %v614_v45 = vsub.f32 %v598_v59, %v1512_v17  ;;  %v676_v7 = vmul.f32 0.6931472, %v945_v44 }
 0x1f0   :  { %958 = vlog2.f32 %v554_v49  ;;  %v949_v5 = vpop.eup %948  ;;  %v637_v34 = vmul.f32 1.442695, %v612_v51  ;;  %v616_v8 = vsub.f32 %v600_v35, %v1508_v14  ;;  %v659_v60 = vadd.f32 1.0, %v947_v36 }
 0x1f1   :  { %960 = vlog2.f32 %v654_v11  ;;  %v951_v6 = vpop.eup %950  ;;  %v672_v57 = vmul.f32 0.6931472, %v949_v5  ;;  %v641_v28 = vmul.f32 1.442695, %v614_v45  ;;  %v703_v18 = vsel %vm1181_vm7, %v676_v7, 0.0 }
 0x1f2   :  { %962 = vlog2.f32 %v657_v40  ;;  %v953_v24 = vpop.eup %952  ;;  %v645_v63 = vmul.f32 1.442695, %v616_v8  ;;  %v678_v29 = vmul.f32 0.6931472, %v951_v6  ;;  %vm1758_vm7 = vnez %v1730_v4 }
 0x1f3   :  { %964 = vlog2.f32 %v658_v38  ;;  %v955_v27 = vpop.eup %954  ;;  %v701_v31 = vsel %vm1221_vm15, %v672_v57, 0.0  ;;  %v661_v15 = vadd.f32 1.0, %v953_v24  ;;  %vm1760_vm15 = vnez %v1722_v58 }
 0x1f4   :  { %966 = vpow2.f32 %v637_v34  ;;  %v957_v30 = vpop.eup %956  ;;  %v716_v17 = vadd.f32 %v715_v33, %v701_v31  ;;  %v580_v32 = vmul.f32 0.6931472, %v955_v27  ;;  %v704_v62 = vsel %vm1234_vm9, %v678_v29, 0.0 }
 0x1f5   :  { %968 = vpow2.f32 %v641_v28  ;;  %v584_v14 = vmul.f32 0.6931472, %v957_v30  ;;  %vm1761_vm9 = vnez %v1736_v13 }
 0x1f6   :  { %v959_v39 = vpop.eup %958  ;;  %970 = vlog2.f32 %v659_v60  ;;  %v599_v46 = vadd.f32 %v580_v32, %v1604_v23 }
 0x1f7   :  { %v961_v61 = vpop.eup %960  ;;  %v586_v37 = vmul.f32 0.6931472, %v959_v39  ;;  %v601_v54 = vadd.f32 %v584_v14, %v1610_v20  ;;  %972 = vpow2.f32 %v645_v63 }
 0x1f8   :  { %v963_v22 = vpop.eup %962  ;;  %v674_v52 = vmul.f32 0.6931472, %v961_v61  ;;  %v615_v55 = vsub.f32 %v599_v46, %v1506_v12  ;;  %974 = vlog2.f32 %v661_v15 }
 0x1f9   :  { %v965_v3 = vpop.eup %964  ;;  %v602_v0 = vadd.f32 %v586_v37, %v1614_v53  ;;  %v617_v23 = vsub.f32 %v601_v54, %v1540_v25  ;;  %v680_v12 = vmul.f32 0.6931472, %v963_v22 }
 0x1fa   :  { %v967_v33 = vpop.eup %966  ;;  %v702_v26 = vsel %vm1260_vm3, %v674_v52, 0.0  ;;  %v643_v50 = vmul.f32 1.442695, %v615_v55  ;;  %v682_v44 = vmul.f32 0.6931472, %v965_v3  ;;  %vm1762_vm3 = vnez %v1732_v9 }
 0x1fb   :  { %v969_v41 = vpop.eup %968  ;;  %v717_v48 = vadd.f32 %v716_v17, %v702_v26  ;;  %v660_v42 = vadd.f32 1.0, %v967_v33  ;;  %v618_v20 = vsub.f32 %v602_v0, %v1534_v21  ;;  %v647_v59 = vmul.f32 1.442695, %v617_v23 }
 0x1fc   :  { %v662_v40 = vadd.f32 1.0, %v969_v41  ;;  %v971_v53 = vpop.eup %970  ;;  %v705_v43 = vsel %vm1757_vm2, %v680_v12, 0.0  ;;  %v706_v36 = vsel %vm1758_vm7, %v682_v44, 0.0 }
 0x1fd   :  { %v718_v38 = vadd.f32 %v717_v48, %v703_v18  ;;  %976 = vlog2.f32 %v660_v42  ;;  %v649_v25 = vmul.f32 1.442695, %v618_v20  ;;  %v973_v11 = vpop.eup %972  ;;  %v684_v21 = vmul.f32 0.6931472, %v971_v53 }
 0x1fe   :  { %978 = vlog2.f32 %v662_v40  ;;  %v975_v35 = vpop.eup %974  ;;  %v664_v45 = vadd.f32 1.0, %v973_v11 }
 0x1ff   :  { %v719_v51 = vadd.f32 %v718_v38, %v704_v62  ;;  %980 = vpow2.f32 %v643_v50  ;;  %v707_v8 = vsel %vm1759_vm8, %v684_v21, 0.0  ;;  %v688_v6 = vmul.f32 0.6931472, %v975_v35 }
 0x200   :  { %982 = vpow2.f32 %v647_v59 }
 0x201   :  { %v720_v49 = vadd.f32 %v719_v51, %v705_v43  ;;  %984 = vpow2.f32 %v649_v25  ;;  %v709_v17 = vsel %vm1761_vm9, %v688_v6, 0.0 }
 0x202   :  { %986 = vlog2.f32 %v664_v45 }
 0x203   :  { %v977_v56 = vpop.eup %976  ;;  %v721_v5 = vadd.f32 %v720_v49, %v706_v36 }
 0x204   :  { %v979_v34 = vpop.eup %978  ;;  %v686_v57 = vmul.f32 0.6931472, %v977_v56 }
 0x205   :  { %v981_v28 = vpop.eup %980  ;;  %v722_v24 = vadd.f32 %v721_v5, %v707_v8  ;;  %v690_v60 = vmul.f32 0.6931472, %v979_v34 }
 0x206   :  { %v708_v47 = vsel %vm1760_vm15, %v686_v57, 0.0  ;;  %v663_v27 = vadd.f32 1.0, %v981_v28  ;;  %v983_v4 = vpop.eup %982 }
 0x207   :  { %v723_v31 = vadd.f32 %v722_v24, %v708_v47  ;;  %v985_v30 = vpop.eup %984  ;;  %v665_v63 = vadd.f32 1.0, %v983_v4  ;;  %v710_v39 = vsel %vm1762_vm3, %v690_v60, 0.0 }
 0x208   :  { %988 = vlog2.f32 %v663_v27  ;;  %v666_v32 = vadd.f32 1.0, %v985_v30  ;;  %v987_v58 = vpop.eup %986 }
 0x209   :  { %v724_v1 = vadd.f32 %v723_v31, %v709_v17  ;;  %990 = vlog2.f32 %v665_v63  ;;  %v694_v61 = vmul.f32 0.6931472, %v987_v58 }
 0x20a   :  { %992 = vlog2.f32 %v666_v32 }
 0x20b   :  { %v725_v15 = vadd.f32 %v724_v1, %v710_v39  ;;  %v712_v3 = vsel %vm1764_vm12, %v694_v61, 0.0 }
 0x20e   :  { %v989_v14 = vpop.eup %988 }
 0x20f   :  { %v692_v46 = vmul.f32 0.6931472, %v989_v14  ;;  %v991_v37 = vpop.eup %990 }
 0x210   :  { %v993_v22 = vpop.eup %992  ;;  %v696_v7 = vmul.f32 0.6931472, %v991_v37 }
 0x211   :  { %v711_v13 = vsel %vm1763_vm13, %v692_v46, 0.0  ;;  %v698_v54 = vmul.f32 0.6931472, %v993_v22 }
 0x212   :  { %v726_v52 = vadd.f32 %v725_v15, %v711_v13  ;;  %v713_v55 = vsel %vm1765_vm14, %v696_v7, 0.0 }
 0x213   :  { %v714_v0 = vsel %vm1766_vm5, %v698_v54, 0.0 }
 0x214   :  { %v727_v9 = vadd.f32 %v726_v52, %v712_v3 }
 0x216   :  { %v728_v33 = vadd.f32 %v727_v9, %v713_v55 }
 0x218   :  { %v729_v29 = vadd.f32 %v728_v33, %v714_v0 }
 0x21a   :  { %v730_v26 = vrot.slane %v729_v29, 4 }
 0x21c   :  { %v731_v23 = vadd.f32 %v730_v26, %v729_v29 }
 0x21e   :  { %v732_v41 = vrot.slane %v731_v23, 2 }
 0x220   :  { %v733_v2 = vadd.f32 %v732_v41, %v731_v23 }
 0x222   :  { %v734_v48 = vrot.slane %v733_v2, 1 }
 0x224   :  { %v735_v16 = vadd.f32 %v734_v48, %v733_v2 }
 0x226   :  { %v737_v10 = vsel %vm736_vm6, %v735_v16, 0.0 }
 0x227   :  { %738 = vst [vmem:[#allocation2] sm:$0xff] %v737_v10 }
 0x228   :  { %749 = dma.vmem_to_hbm [thread:$0]  %s745_s2, 128, %s747_s29, [#allocation3]  }
 0x229   :  { %1018 = dma.done.wait [#allocation3], 128  }
 0x22a   :  { %1019 = vsyncadd [#allocation3], 4294967168 }
 0x22b   :  { %754 = vsyncpa [#allocation3], 1 }

</bundles_post_ra>
